<compile_context>
chip_gen: v6e
topology: v6e:2x2x1
jax: 0.10.0
libtpu: 0.0.40
codegen_flags: <defaults>
</compile_context>

<pallas_src>
import functools

import jax
import jax.numpy as jnp
from jax.experimental import pallas as pl
from jax.experimental.pallas import tpu as pltpu


def _channel_attention_kernel(x_ref, w_ref, o_ref, sum_ref, max_ref,
                              *, tb, cr, inv_len):
    """Grid = (batch tiles, length tiles).

    x_ref:   [tb, tl, C]  input block, NLC layout (C on lanes, tl on sublanes)
    w_ref:   [2*Cr, C]    packed weights: rows [0:Cr] = w1^T, rows [Cr:2Cr] = w2
    o_ref:   [tb, C]      sigmoid channel-attention weights (lane-dense store)
    sum_ref: [tb, C] f32  running sum over L (VMEM scratch, persists over grid)
    max_ref: [tb, C] f32  running max over L (VMEM scratch, persists over grid)
    """
    li = pl.program_id(1)

    @pl.when(li == 0)
    def _init():
        sum_ref[...] = jnp.zeros_like(sum_ref)
        max_ref[...] = jnp.full_like(max_ref, -jnp.inf)

    x = x_ref[...].astype(jnp.float32)                    # [tb, tl, C]
    sum_ref[...] += jnp.sum(x, axis=1)                    # sublane reduce
    max_ref[...] = jnp.maximum(max_ref[...], jnp.max(x, axis=1))

    @pl.when(li == pl.num_programs(1) - 1)
    def _finalize():
        avg_p = sum_ref[...] * inv_len                    # [tb, C]
        max_p = max_ref[...]                              # [tb, C]

        # Stack avg & max rows -> one pair of MXU matmuls for the shared fc.
        p = jnp.concatenate([avg_p, max_p], axis=0)       # [2*tb, C]

        w1t = w_ref[0:cr, :].astype(jnp.float32)          # [Cr, C] (static slice)
        w2 = w_ref[cr:2 * cr, :].astype(jnp.float32)      # [Cr, C] (static slice)

        # p @ w1 == dot_general(p, w1^T) contracting both C (lane) dims.
        h = jnp.maximum(
            jax.lax.dot_general(p, w1t, (((1,), (1,)), ((), ())),
                                preferred_element_type=jnp.float32), 0.0)
        y = jnp.dot(h, w2, preferred_element_type=jnp.float32)   # [2*tb, C]

        o_ref[...] = jax.nn.sigmoid(y[:tb] + y[tb:]).astype(o_ref.dtype)


def _vmem_capacity_bytes():
    try:
        return int(pltpu.get_tpu_info().vmem_capacity_bytes)
    except Exception:
        return 64 << 20   # conservative (v7x-sized) fallback


def _choose_tiles(B, C, L, itemsize):
    """Pick (tb, tl, vmem_limit_bytes) from a VMEM budget."""
    vmem = _vmem_capacity_bytes()
    x_block_budget = vmem // 8          # double-buffered x block <= vmem / 4
    c_pad = ((C + 127) // 128) * 128

    def divisors(n):
        return [d for d in range(1, n + 1) if n % d == 0]

    # Valid tiles keep the (8, 128) layout constraints: batch / length tiles
    # are multiples of 8 or the full extent.
    tb_cands = sorted({d for d in divisors(B) if d % 8 == 0} | {B})
    tl_cands = sorted({d for d in divisors(L) if d % 8 == 0} | {L})

    def block_bytes(tb, tl):
        tl_pad = ((tl + 7) // 8) * 8
        return tb * tl_pad * c_pad * itemsize

    best = None
    for prefer_split in (True, False):
        for tb in sorted(tb_cands, reverse=True):
            if prefer_split and B >= 16 and B // tb < 2:
                continue  # keep >=2 batch steps so both v7x TCs get work
            fits = [tl for tl in tl_cands if block_bytes(tb, tl) <= x_block_budget]
            if fits:
                best = (tb, max(fits))
                break
        if best is not None:
            break
    if best is None:  # correctness fallback for degenerate shapes
        best = (min(tb_cands), min(tl_cands))
    tb, tl = best

    # Scoped VMEM: double-buffered x block + headroom for weights/accumulators,
    # kept well under physical VMEM on every generation.
    vmem_limit = min(vmem - (8 << 20), 2 * block_bytes(tb, tl) + (8 << 20))
    vmem_limit = max(vmem_limit, 16 << 20)
    return tb, tl, int(vmem_limit)


@functools.partial(jax.jit, static_argnames=("tb", "tl", "vmem_limit"))
def _channel_attention_call(x_nlc, w_slab, *, tb, tl, vmem_limit):
    B, L, C = x_nlc.shape
    two_cr = w_slab.shape[0]
    cr = two_cr // 2

    kernel = functools.partial(_channel_attention_kernel,
                               tb=tb, cr=cr, inv_len=1.0 / L)

    out = pl.pallas_call(
        kernel,
        out_shape=jax.ShapeDtypeStruct((B, C), x_nlc.dtype),
        grid_spec=pltpu.PrefetchScalarGridSpec(
            num_scalar_prefetch=0,
            grid=(B // tb, L // tl),
            in_specs=[
                pl.BlockSpec((tb, tl, C), lambda b, l: (b, l, 0)),   # x (NLC)
                pl.BlockSpec((two_cr, C), lambda b, l: (0, 0)),      # weights
            ],
            out_specs=pl.BlockSpec((tb, C), lambda b, l: (b, 0)),
            scratch_shapes=[pltpu.VMEM((tb, C), jnp.float32),        # running sum
                            pltpu.VMEM((tb, C), jnp.float32)],       # running max
        ),
        compiler_params=pltpu.CompilerParams(
            dimension_semantics=("parallel", "arbitrary"),
            vmem_limit_bytes=vmem_limit),
    )(x_nlc, w_slab)

    # PyTorch returns [B, C, 1]; restore the singleton length dim outside the
    # kernel so the in-kernel store stays lane-dense.
    return out[:, :, None]


def channel_attention_pallas(x, w1, w2):
    """x: [B, C, L] (PyTorch NCL); w1: [C, C//r]; w2: [C//r, C] (1x1-conv weights)."""
    B, C, L = x.shape
    Cr = w1.shape[1]
    assert w1.shape == (C, Cr) and w2.shape == (Cr, C)

    tb, tl, vmem_limit = _choose_tiles(B, C, L, jnp.dtype(x.dtype).itemsize)

    # NCL -> NLC: put the channel dim on lanes for the kernel (layout plumbing
    # outside the kernel; pooling then reduces over the sublane axis).
    x_nlc = jnp.transpose(x, (0, 2, 1))

    # Dense weight slab [2*Cr, C]: rows [0:Cr] = w1^T, rows [Cr:2Cr] = w2.
    # Keeps both in-kernel slices full lane width with a sublane cut at Cr,
    # and preserves the weights' dtype (no silent f32 upcast).
    w_slab = jnp.concatenate([w1.T, w2], axis=0)

    return _channel_attention_call(x_nlc, w_slab, tb=tb, tl=tl,
                                   vmem_limit=vmem_limit)


def reference_forward(x, w1, w2):
    """Pure-JAX mirror of the PyTorch forward (for sanity checking)."""
    avg_p = jnp.mean(x, axis=-1)                      # [B, C]
    max_p = jnp.max(x, axis=-1)                       # [B, C]
    fc = lambda t: jnp.maximum(t @ w1, 0.0) @ w2
    out = jax.nn.sigmoid(fc(avg_p) + fc(max_p))       # [B, C]
    return out[:, :, None]                            # [B, C, 1]


if __name__ == "__main__":
    # x is [B, in_channels, L]; reduction=4 -> hidden = in_channels // 4.
    B, C, L = 4, 128, 16
    reduction = 4
    Cr = C // reduction

    key = jax.random.PRNGKey(0)
    kx, k1, k2 = jax.random.split(key, 3)
    x = jax.random.normal(kx, (B, C, L), jnp.float32)
    # Conv1d(C, Cr, 1, bias=False) weight is [Cr, C, 1]; we store its transpose
    # [C, Cr] so the math is p @ w1. Same convention for the second conv.
    w1 = jax.random.normal(k1, (C, Cr), jnp.float32) / jnp.sqrt(float(C))
    w2 = jax.random.normal(k2, (Cr, C), jnp.float32) / jnp.sqrt(float(Cr))

    out = jax.block_until_ready(channel_attention_pallas(x, w1, w2))

    assert out.shape == (B, C, 1)
    assert bool(jnp.all(jnp.isfinite(out)))

    ref = jax.block_until_ready(reference_forward(x, w1, w2))
    assert bool(jnp.allclose(out, ref, rtol=5e-3, atol=5e-3)), (
        float(jnp.max(jnp.abs(out - ref))))

    print("KERNEL_OK")
</pallas_src>

<mosaic_0001>
module attributes {stable_mosaic.version = 11 : i64} {
  func.func @_channel_attention_kernel(%arg0: i32, %arg1: i32, %arg2: memref<4x16x128xf32, #tpu.memory_space<vmem>>, %arg3: memref<64x128xf32, #tpu.memory_space<vmem>>, %arg4: memref<4x128xf32, #tpu.memory_space<vmem>>, %arg5: memref<4x128xf32, #tpu.memory_space<vmem>>, %arg6: memref<4x128xf32, #tpu.memory_space<vmem>>) attributes {dimension_semantics = [#tpu.dimension_semantics<parallel>, #tpu.dimension_semantics<arbitrary>], iteration_bounds = array<i64: 1, 1>, scalar_prefetch = 0 : i64, scratch_operands = 2 : i64, tpu.core_type = #tpu.core_type<tc>, window_params = [{transform_indices = @transform_0, window_bounds = array<i64: 4, 16, 128>}, {pipeline_mode = #tpu.pipeline_mode<synchronous>, transform_indices = @transform_1, window_bounds = array<i64: 64, 128>}, {transform_indices = @transform_2, window_bounds = array<i64: 4, 128>}]} {
    %c0_i32 = arith.constant 0 : i32
    %0 = arith.cmpi eq, %arg1, %c0_i32 : i32
    %1 = arith.extui %0 : i1 to i32
    %c0_i32_0 = arith.constant 0 : i32
    %2 = arith.cmpi ne, %1, %c0_i32_0 : i32
    scf.if %2 {
      %cst_14 = arith.constant 0.000000e+00 : f32
      %15 = vector.broadcast %cst_14 : f32 to vector<4x128xf32>
      %c0_15 = arith.constant 0 : index
      %c0_16 = arith.constant 0 : index
      %16 = vector.load %arg5[%c0_15, %c0_16] : memref<4x128xf32, #tpu.memory_space<vmem>>, vector<4x128xf32>
      tpu.vector_store %arg5[%c0_15, %c0_16], %15 {strides = array<i32>} : memref<4x128xf32, #tpu.memory_space<vmem>>, vector<4x128xf32>,
      %cst_17 = arith.constant 0xFF800000 : f32
      %17 = vector.broadcast %cst_17 : f32 to vector<4x128xf32>
      %c0_18 = arith.constant 0 : index
      %c0_19 = arith.constant 0 : index
      %18 = vector.load %arg6[%c0_18, %c0_19] : memref<4x128xf32, #tpu.memory_space<vmem>>, vector<4x128xf32>
      tpu.vector_store %arg6[%c0_18, %c0_19], %17 {strides = array<i32>} : memref<4x128xf32, #tpu.memory_space<vmem>>, vector<4x128xf32>,
    } else {
    }
    %c0 = arith.constant 0 : index
    %c0_1 = arith.constant 0 : index
    %c0_2 = arith.constant 0 : index
    %3 = vector.load %arg2[%c0, %c0_1, %c0_2] : memref<4x16x128xf32, #tpu.memory_space<vmem>>, vector<4x16x128xf32>
    %c0_3 = arith.constant 0 : index
    %c0_4 = arith.constant 0 : index
    %4 = vector.load %arg5[%c0_3, %c0_4] : memref<4x128xf32, #tpu.memory_space<vmem>>, vector<4x128xf32>
    %cst = arith.constant dense<0.000000e+00> : vector<4x128xf32>
    %5 = vector.multi_reduction <add>, %3, %cst [1] : vector<4x16x128xf32> to vector<4x128xf32>
    %6 = arith.addf %4, %5 : vector<4x128xf32>
    %c0_5 = arith.constant 0 : index
    %c0_6 = arith.constant 0 : index
    %7 = vector.load %arg5[%c0_5, %c0_6] : memref<4x128xf32, #tpu.memory_space<vmem>>, vector<4x128xf32>
    tpu.vector_store %arg5[%c0_5, %c0_6], %6 {strides = array<i32>} : memref<4x128xf32, #tpu.memory_space<vmem>>, vector<4x128xf32>,
    %c0_7 = arith.constant 0 : index
    %c0_8 = arith.constant 0 : index
    %8 = vector.load %arg6[%c0_7, %c0_8] : memref<4x128xf32, #tpu.memory_space<vmem>>, vector<4x128xf32>
    %cst_9 = arith.constant dense<0xFF800000> : vector<4x128xf32>
    %9 = vector.multi_reduction <maximumf>, %3, %cst_9 [1] : vector<4x16x128xf32> to vector<4x128xf32>
    %10 = arith.maximumf %8, %9 : vector<4x128xf32>
    %c0_10 = arith.constant 0 : index
    %c0_11 = arith.constant 0 : index
    %11 = vector.load %arg6[%c0_10, %c0_11] : memref<4x128xf32, #tpu.memory_space<vmem>>, vector<4x128xf32>
    tpu.vector_store %arg6[%c0_10, %c0_11], %10 {strides = array<i32>} : memref<4x128xf32, #tpu.memory_space<vmem>>, vector<4x128xf32>,
    %c0_i32_12 = arith.constant 0 : i32
    %12 = arith.cmpi eq, %arg1, %c0_i32_12 : i32
    %13 = arith.extui %12 : i1 to i32
    %c0_i32_13 = arith.constant 0 : i32
    %14 = arith.cmpi ne, %13, %c0_i32_13 : i32
    scf.if %14 {
      %c0_14 = arith.constant 0 : index
      %c0_15 = arith.constant 0 : index
      %15 = vector.load %arg5[%c0_14, %c0_15] : memref<4x128xf32, #tpu.memory_space<vmem>>, vector<4x128xf32>
      %cst_16 = arith.constant 6.250000e-02 : f32
      %16 = vector.broadcast %cst_16 : f32 to vector<4x128xf32>
      %17 = arith.mulf %15, %16 : vector<4x128xf32>
      %c0_17 = arith.constant 0 : index
      %c0_18 = arith.constant 0 : index
      %18 = vector.load %arg6[%c0_17, %c0_18] : memref<4x128xf32, #tpu.memory_space<vmem>>, vector<4x128xf32>
      %19 = tpu.concatenate %17, %18 in 0 : vector<4x128xf32>, vector<4x128xf32> -> vector<8x128xf32>
      %c0_19 = arith.constant 0 : index
      %c0_20 = arith.constant 0 : index
      %20 = vector.load %arg3[%c0_19, %c0_20] : memref<64x128xf32, #tpu.memory_space<vmem>>, vector<32x128xf32>
      %c32 = arith.constant 32 : index
      %c0_21 = arith.constant 0 : index
      %21 = vector.load %arg3[%c32, %c0_21] : memref<64x128xf32, #tpu.memory_space<vmem>>, vector<32x128xf32>
      %cst_22 = arith.constant dense<0.000000e+00> : vector<8x32xf32>
      %22 = tpu.matmul %19, %20, %cst_22 {dimension_numbers = #tpu.dot_dimension_numbers<[1], [1], [0], [0], [0, 0, 1, 0], [], []>} : vector<8x128xf32>, vector<32x128xf32>, vector<8x32xf32> -> vector<8x32xf32>
      %cst_23 = arith.constant 0.000000e+00 : f32
      %23 = vector.broadcast %cst_23 : f32 to vector<8x32xf32>
      %24 = arith.maximumf %22, %23 : vector<8x32xf32>
      %cst_24 = arith.constant dense<0.000000e+00> : vector<8x128xf32>
      %25 = tpu.matmul %24, %21, %cst_24 {dimension_numbers = #tpu.dot_dimension_numbers<[1], [0], [0], [1], [0, 0, 1, 1], [], []>} : vector<8x32xf32>, vector<32x128xf32>, vector<8x128xf32> -> vector<8x128xf32>
      %26 = vector.extract_strided_slice %25 {offsets = [0, 0], sizes = [4, 128], strides = [1, 1]} : vector<8x128xf32> to vector<4x128xf32>
      %27 = vector.extract_strided_slice %25 {offsets = [4, 0], sizes = [4, 128], strides = [1, 1]} : vector<8x128xf32> to vector<4x128xf32>
      %28 = arith.addf %26, %27 : vector<4x128xf32>
      %29 = arith.negf %28 : vector<4x128xf32>
      %30 = math.exp %29 : vector<4x128xf32>
      %cst_25 = arith.constant 1.000000e+00 : f32
      %31 = vector.broadcast %cst_25 : f32 to vector<4x128xf32>
      %32 = arith.addf %31, %30 : vector<4x128xf32>
      %33 = arith.divf %31, %32 : vector<4x128xf32>
      %c0_26 = arith.constant 0 : index
      %c0_27 = arith.constant 0 : index
      %34 = vector.load %arg4[%c0_26, %c0_27] : memref<4x128xf32, #tpu.memory_space<vmem>>, vector<4x128xf32>
      tpu.vector_store %arg4[%c0_26, %c0_27], %33 {strides = array<i32>} : memref<4x128xf32, #tpu.memory_space<vmem>>, vector<4x128xf32>,
    } else {
    }
    return
  }
  func.func @transform_0(%arg0: i32, %arg1: i32) -> (i32, i32, i32) {
    %c0_i32 = arith.constant 0 : i32
    %c0_i32_0 = arith.constant 0 : i32
    return %arg0, %arg1, %c0_i32 : i32, i32, i32
  }
  func.func @transform_1(%arg0: i32, %arg1: i32) -> (i32, i32) {
    %c0_i32 = arith.constant 0 : i32
    %c0_i32_0 = arith.constant 0 : i32
    %c0_i32_1 = arith.constant 0 : i32
    return %c0_i32, %c0_i32_0 : i32, i32
  }
  func.func @transform_2(%arg0: i32, %arg1: i32) -> (i32, i32) {
    %c0_i32 = arith.constant 0 : i32
    %c0_i32_0 = arith.constant 0 : i32
    return %arg0, %c0_i32 : i32, i32
  }
}

</mosaic_0001>

<bundles_post_ra>
// kernel: _channel_attention_call.1
= control target key start
LH: loop header
LB: loop body
LE: loop exit
PB: predicated region body
PF: predicated region fallthrough
CT: control target
= control target key end

     0   :  { %7 = vsyncpa [#allocation5], 0  ;;  %s485_s0 = inlined_call_operand.hbm [shape: f32[4,16,128], index: 0, kind: input, shape index: {}]   ;;  %s486_s1 = inlined_call_operand.hbm [shape: f32[64,128], index: 1, kind: input, shape index: {}]   ;;  %s487_s2 = inlined_call_operand.hbm [shape: f32[4,128], index: 2, kind: output, shape index: {}]  }
   0x1   :  { %8 = vsyncpa [#allocation8], 0 }
   0x2   :  { %9 = vsyncpa [#allocation6], 0  ;;  %s438_s9 = smov [#allocation4]  }
   0x3   :  { %s15_s10 = sshll.u32 %s438_s9, 4  ;;  %s16_s10 = int_to_ptr.vmem [resolvable:$true] %s15_s10 }
   0x4   :  { %s380_s11 = scalar_lea.vmem %s16_s10, 1024  ;;  %p385_p1 = scmp.lt.s32.totalorder %s16_s10, %s16_s10 }
   0x5   :  { %p381_p0 = scmp.ne.s32.totalorder %s16_s10, %s380_s11  ;;  %p386_p2 = scmp.lt.s32.totalorder %s380_s11, %s380_s11 }
   0x7   :  { %p387_p3 = por %p386_p2, %p385_p1 }
   0x9   :  { %p388_p4 = pnand %p387_p3, %p381_p0 }
   0xb   :  { %391 = shalt.err (!%p388_p4)
}
   0xc   :  { %s439_s12 = smov 128   ;;  %s440_s13 = smov 8  }
   0xd   :  { %21 = dma.hbm_to_vmem [thread:$0]  %s485_s0, 1024, %s16_s10, [#allocation5], %s439_s12, %s439_s12, %s440_s13  }
   0xe   :  { %s441_s16 = smov [#allocation7]  }
   0xf   :  { %s27_s17 = sshll.u32 %s441_s16, 4  ;;  %s28_s17 = int_to_ptr.vmem [resolvable:$true] %s27_s17 }
  0x10   :  { %s400_s18 = scalar_lea.vmem %s28_s17, 1024  ;;  %p405_p6 = scmp.lt.s32.totalorder %s28_s17, %s28_s17 }
  0x11   :  { %p401_p5 = scmp.ne.s32.totalorder %s28_s17, %s400_s18  ;;  %p406_p7 = scmp.lt.s32.totalorder %s400_s18, %s400_s18 }
  0x13   :  { %p407_p8 = por %p406_p7, %p405_p6 }
  0x15   :  { %p408_p9 = pnand %p407_p8, %p401_p5 }
  0x17   :  { %411 = shalt.err (!%p408_p9)
}
  0x18   :  { %33 = dma.hbm_to_vmem [thread:$0]  %s486_s1, 1024, %s28_s17, [#allocation8], %s439_s12, %s439_s12, %s440_s13  }
  0x19   :  { %432 = dma.done.wait [#allocation5], 1024  }
  0x1a   :  { %433 = vsyncadd [#allocation5], 4294966272 }
  0x1b   :  { %434 = dma.done.wait [#allocation8], 1024  }
  0x1c   :  { %435 = vsyncadd [#allocation8], 4294966272  ;;  %v442_v0 = vmov 0.0   ;;  %vm443_vm0 = vmmov 0   ;;  %v444_v1 = vmov -inf   ;;  %v149_v2 = vld [vmem:[#allocation7 + $0x18] sm:$0xff] }
  0x1d   :  { %338 = vmatprep.subr.mxu0 %v442_v0  ;;  %44 = vst [vmem:[#allocation2] sm:$0xf] %v442_v0  ;;  %346 = vmatprep.mubr.msk.f32.mxu0 %vm443_vm0, %v442_v0  ;;  %45 = vst [vmem:[#allocation3] sm:$0xf] %v444_v1  ;;  %v148_v3 = vld [vmem:[#allocation7 + $0x10] sm:$0xff]  ;;  %v46_v4 = vld [vmem:[#allocation4] sm:$0xff] }
  0x1e   :  { %349 = vmatprep.subr.mxu1 %v442_v0  ;;  %357 = vmatprep.mubr.msk.f32.mxu1 %vm443_vm0, %v442_v0  ;;  %v47_v5 = vld [vmem:[#allocation4 + $0x8] sm:$0xff]  ;;  %v48_v6 = vld [vmem:[#allocation4 + $0x10] sm:$0xff]  ;;  %v49_v7 = vld [vmem:[#allocation4 + $0x18] sm:$0xff]  ;;  %vm87_vm1 = vcmask 1041409   ;;  %vm89_vm2 = vcmask 1042434   ;;  %vm91_vm3 = vcmask 1043459  }
  0x1f   :  { %339 = vmatpush3.xpose.msra.mxu0 %v149_v2  ;;  %v50_v8 = vld [vmem:[#allocation4 + $0x20] sm:$0xff]  ;;  %v55_v9 = vadd.f32 %v47_v5, %v46_v4  ;;  %v97_v10 = vmax.f32 %v46_v4, %v47_v5  ;;  %v51_v11 = vld [vmem:[#allocation4 + $0x28] sm:$0xff]  ;;  %v52_v12 = vld [vmem:[#allocation4 + $0x30] sm:$0xff]  ;;  %v62_v14 = vadd.f32 %v49_v7, %v48_v6  ;;  %v104_v15 = vmax.f32 %v48_v6, %v49_v7  ;;  %s445_s0 = smov [#allocation9]  }
  0x20   :  { %340 = vmatprep.subr.mxu0 %v442_v0  ;;  %v53_v13 = vld [vmem:[#allocation4 + $0x38] sm:$0xff]  ;;  %v69_v17 = vadd.f32 %v51_v11, %v50_v8  ;;  %v111_v22 = vmax.f32 %v50_v8, %v51_v11  ;;  %v152_v25 = vld [vmem:[#allocation7 + $0x30] sm:$0xff]  ;;  %v147_v26 = vld [vmem:[#allocation7 + $0x8] sm:$0xff]  ;;  %vm144_vm4 = vcmask 1043456   ;;  %vm225_vm5 = vcmask 261120   ;;  %s316_s1 = sshll.u32 %s445_s0, 4  ;;  %s317_s1 = int_to_ptr.vmem [resolvable:$true] %s316_s1 }
  0x21   :  { %v56_v16 = vrot.slane %v55_v9, 4  ;;  %v76_v18 = vadd.f32 %v53_v13, %v52_v12  ;;  %v98_v19 = vrot.slane %v97_v10, 4  ;;  %v63_v20 = vrot.slane %v62_v14, 4  ;;  %v153_v24 = vld [vmem:[#allocation7 + $0x38] sm:$0xff]  ;;  %v146_v43 = vld [vmem:[#allocation7] sm:$0xff]  ;;  %s412_s21 = scalar_lea.vmem %s317_s1, 64  ;;  %p417_p11 = scmp.lt.s32.totalorder %s317_s1, %s317_s1 }
  0x22   :  { %v105_v21 = vrot.slane %v104_v15, 4  ;;  %v118_v23 = vmax.f32 %v52_v12, %v53_v13  ;;  %v70_v28 = vrot.slane %v69_v17, 4  ;;  %350 = vmatpush3.msra.mxu1 %v153_v24  ;;  %v112_v33 = vrot.slane %v111_v22, 4  ;;  %v151_v24 = vld [vmem:[#allocation7 + $0x28] sm:$0xff]  ;;  %p413_p10 = scmp.ne.s32.totalorder %s317_s1, %s412_s21  ;;  %p418_p12 = scmp.lt.s32.totalorder %s412_s21, %s412_s21 }
  0x23   :  { %341 = vmatpush3.xpose.msra.mxu0 %v148_v3  ;;  %v57_v27 = vadd.f32 %v56_v16, %v55_v9  ;;  %v77_v29 = vrot.slane %v76_v18, 4  ;;  %v99_v30 = vmax.f32 %v97_v10, %v98_v19  ;;  %v64_v31 = vadd.f32 %v63_v20, %v62_v14  ;;  %351 = vmatprep.subr.mxu1 %v442_v0 }
  0x24   :  { %342 = vmatprep.subr.mxu0 %v442_v0  ;;  %v106_v32 = vmax.f32 %v104_v15, %v105_v21  ;;  %v119_v34 = vrot.slane %v118_v23, 4  ;;  %v71_v36 = vadd.f32 %v70_v28, %v69_v17  ;;  %352 = vmatpush3.msra.mxu1 %v152_v25  ;;  %v113_v41 = vmax.f32 %v111_v22, %v112_v33  ;;  %v54_v7 = vld [vmem:[#allocation2] sm:$0xf]  ;;  %v96_v13 = vld [vmem:[#allocation3] sm:$0xf]  ;;  %v150_v25 = vld [vmem:[#allocation7 + $0x20] sm:$0xff]  ;;  %p419_p13 = por %p418_p12, %p417_p11 }
  0x25   :  { %v58_v35 = vrot.slane %v57_v27, 2  ;;  %v78_v37 = vadd.f32 %v77_v29, %v76_v18  ;;  %v100_v38 = vrot.slane %v99_v30, 2  ;;  %v65_v39 = vrot.slane %v64_v31, 2  ;;  %353 = vmatprep.subr.mxu1 %v442_v0 }
  0x26   :  { %v107_v40 = vrot.slane %v106_v32, 2  ;;  %v120_v42 = vmax.f32 %v118_v23, %v119_v34  ;;  %v72_v45 = vrot.slane %v71_v36, 2  ;;  %v114_v50 = vrot.slane %v113_v41, 2  ;;  %354 = vmatpush3.msra.mxu1 %v151_v24  ;;  %p420_p0 = pnand %p419_p13, %p413_p10 }
  0x27   :  { %343 = vmatpush3.xpose.msra.mxu0 %v147_v26  ;;  %v59_v44 = vadd.f32 %v58_v35, %v57_v27  ;;  %v79_v46 = vrot.slane %v78_v37, 2  ;;  %v101_v47 = vmax.f32 %v99_v30, %v100_v38  ;;  %v66_v48 = vadd.f32 %v65_v39, %v64_v31  ;;  %355 = vmatprep.subr.mxu1 %v442_v0 }
  0x28   :  { %344 = vmatprep.subr.mxu0 %v442_v0  ;;  %v108_v49 = vmax.f32 %v106_v32, %v107_v40  ;;  %v121_v51 = vrot.slane %v120_v42, 2  ;;  %v73_v53 = vadd.f32 %v72_v45, %v71_v36  ;;  %v115_v58 = vmax.f32 %v113_v41, %v114_v50  ;;  %356 = vmatpush3.msra.mxu1 %v150_v25 }
  0x29   :  { %v60_v52 = vrot.slane %v59_v44, 1  ;;  %v80_v54 = vadd.f32 %v79_v46, %v78_v37  ;;  %v102_v55 = vrot.slane %v101_v47, 1  ;;  %v67_v56 = vrot.slane %v66_v48, 1 }
  0x2a   :  { %v109_v57 = vrot.slane %v108_v49, 1  ;;  %v122_v59 = vmax.f32 %v120_v42, %v121_v51  ;;  %v74_v61 = vrot.slane %v73_v53, 1  ;;  %v116_v3 = vrot.slane %v115_v58, 1 }
  0x2b   :  { %345 = vmatpush3.xpose.msra.mxu0 %v146_v43  ;;  %v61_v60 = vadd.f32 %v60_v52, %v59_v44  ;;  %v81_v62 = vrot.slane %v80_v54, 1  ;;  %v103_v63 = vmax.f32 %v101_v47, %v102_v55  ;;  %v68_v1 = vadd.f32 %v67_v56, %v66_v48 }
  0x2c   :  { %v110_v2 = vmax.f32 %v108_v49, %v109_v57  ;;  %v123_v4 = vrot.slane %v122_v59, 1  ;;  %v75_v5 = vadd.f32 %v74_v61, %v73_v53  ;;  %v117_v9 = vmax.f32 %v115_v58, %v116_v3 }
  0x2d   :  { %v82_v6 = vadd.f32 %v81_v62, %v80_v54  ;;  %v88_v8 = vsel %vm87_vm1, %v68_v1, %v61_v60 }
  0x2e   :  { %v124_v10 = vmax.f32 %v122_v59, %v123_v4  ;;  %v129_v11 = vsel %vm87_vm1, %v110_v2, %v103_v63  ;;  %v90_v12 = vsel %vm89_vm2, %v75_v5, %v88_v8 }
  0x2f   :  { %v92_v14 = vsel %vm91_vm3, %v82_v6, %v90_v12  ;;  %v130_v15 = vsel %vm89_vm2, %v117_v9, %v129_v11 }
  0x30   :  { %v94_v16 = vadd.f32 %v92_v14, %v54_v7  ;;  %v131_v17 = vsel %vm91_vm3, %v124_v10, %v130_v15 }
  0x31   :  { %v133_v18 = vmax.f32 %v96_v13, %v131_v17 }
  0x32   :  { %95 = vst [vmem:[#allocation2] sm:$0xf] %v94_v16 }
  0x33   :  { %134 = vst [vmem:[#allocation3] sm:$0xf] %v133_v18 }
  0x39   :  { %v138_v19 = vld [vmem:[#allocation2] sm:$0xf] }
  0x3a   :  { %v139_v20 = vmul.f32 0.0625, %v138_v19  ;;  %v140_v21 = vld [vmem:[#allocation3] sm:$0xf] }
  0x3b   :  { %v142_v22 = vrot.slane %v140_v21, 4 }
  0x3d   :  { %v145_v23 = vsel %vm144_vm4, %v139_v20, %v142_v22 }
  0x3e   :  { %347 = vmatmul.mubr.f32.vlgmr.msra.gmra.mxu0 %v145_v23 }
  0xfe   :  { %v220_v26 = vpop.f32.mrf.mxu0 }
  0xff   :  { %v224_v27 = vmax.f32 %v220_v26, 0.0 }
 0x100   :  { %v348_v28 = vpop.f32.mrf.mxu0 }
 0x101   :  { %358 = vmatmul.mubr.msk.f32.vlgmr.msra.gmra.mxu1 %vm225_vm5, %v224_v27 }
 0x1c1   :  { %v295_v29 = vpop.f32.mrf.mxu1 }
 0x1c2   :  { %v300_v30 = vrot.slane %v295_v29, 4 }
 0x1c3   :  { %v359_v31 = vpop.f32.mrf.mxu1 }
 0x1c4   :  { %v302_v32 = vadd.f32 %v300_v30, %v295_v29 }
 0x1c6   :  { %v327_v33 = vmul.f32 -1.442695, %v302_v32 }
 0x1c8   :  { %368 = vpow2.f32 %v327_v33 }
 0x1d5   :  { %v369_v34 = vpop.eup %368 }
 0x1d6   :  { %v306_v35 = vadd.f32 1.0, %v369_v34 }
 0x1d8   :  { %370 = vrcp.f32 %v306_v35 }
 0x1e5   :  { %v371_v0 = vpop.eup %370 }
 0x1e6   :  { %309 = vst [vmem:[#allocation9] sm:$0xf] %v371_v0 }
 0x1e7   :  { %423 = shalt.err (!%p420_p0)
}
 0x1e8   :  { %319 = dma.vmem_to_hbm [thread:$0]  %s317_s1, 64, %s487_s2, [#allocation6]  }
 0x1e9   :  { %436 = dma.done.wait [#allocation6], 64  }
 0x1ea   :  { %437 = vsyncadd [#allocation6], 4294967232 }
 0x1eb   :  { %323 = vsyncpa [#allocation5], 1 }
 0x1ec   :  { %324 = vsyncpa [#allocation8], 1 }
 0x1ed   :  { %325 = vsyncpa [#allocation6], 1 }

</bundles_post_ra>
